<compile_context>
chip_gen: v5e
topology: v5e:2x2
jax: 0.10.0
libtpu: 0.0.40
codegen_flags: <defaults>
</compile_context>

<pallas_src>
import functools

import jax
import jax.numpy as jnp
from jax import lax
from jax.experimental import pallas as pl
from jax.experimental.pallas import tpu as pltpu


def _softmax_focal_loss_kernel(nvalid_ref, pred_ref, tgt_ref, out_ref, *,
                               gamma, loss_weight, tm):
    """One grid step: a (tm, C) tile of rows -> one scalar partial sum."""
    i = pl.program_id(0)
    n_valid = nvalid_ref[0]

    x = pred_ref[...].astype(jnp.float32)      # (tm, C) logits (f32 compute)
    tgt = tgt_ref[...]                         # (tm, 1) int32 labels
    c = x.shape[-1]

    # Numerically stable log-sum-exp over the class (lane) axis.
    m = jnp.max(x, axis=-1, keepdims=True)                       # (tm, 1)
    e = jnp.exp(x - m)                                           # (tm, C)
    sumexp = jnp.sum(e, axis=-1, keepdims=True)                  # (tm, 1)

    # Gather target-class logit / prob via a one-hot mask (classes on lanes).
    col = lax.broadcasted_iota(jnp.int32, x.shape, 1)            # (tm, C)
    onehot = col == tgt
    logit_t = jnp.sum(jnp.where(onehot, x, 0.0), axis=-1, keepdims=True)
    num_t = jnp.sum(jnp.where(onehot, e, 0.0), axis=-1, keepdims=True)

    ce = (m - logit_t) + jnp.log(sumexp)       # per-sample CE (stable, >= 0)
    p = num_t / sumexp                         # target prob; reuses e, no 2nd exp
    q = jnp.maximum(1.0 - p, 0.0)              # guard tiny negative rounding
    if gamma == 1.5:
        mod = q * jnp.sqrt(q)                  # q**1.5 without pow
    elif gamma == 2.0:
        mod = q * q
    elif gamma == 1.0:
        mod = q
    else:
        mod = jnp.power(q, gamma)
    focal = mod * ce                           # (tm, 1)

    # Ignore out-of-range labels (e.g. ignore_index=-100): contribute 0.
    label_ok = jnp.logical_and(tgt >= 0, tgt < c)
    focal = jnp.where(label_ok, focal, 0.0)

    tile_end = (i + 1) * tm
    is_full = tile_end <= n_valid              # no padded rows in this tile

    @pl.when(is_full)
    def _():
        out_ref[...] = (loss_weight * jnp.sum(focal)).reshape(1, 1, 1)

    @pl.when(jnp.logical_not(is_full))
    def _():
        row = lax.broadcasted_iota(jnp.int32, (tm, 1), 0) + i * tm
        masked = jnp.where(row < n_valid, focal, 0.0)
        out_ref[...] = (loss_weight * jnp.sum(masked)).reshape(1, 1, 1)


def _round_up(x, m):
    return ((x + m - 1) // m) * m


def _vmem_limit_bytes():
    """Generation-aware scoped-VMEM limit: ~3/4 of physical, clamped [32,96] MiB."""
    try:
        cap = pltpu.get_tpu_info().vmem_capacity_bytes
    except Exception:
        cap = 64 << 20                      # conservative (v7x-sized) fallback
    return int(min(max(cap * 3 // 4, 32 << 20), 96 << 20))


def _choose_tm(n, c, pred_dtype, vmem_limit):
    """Largest row tile (multiple of 32) whose VMEM footprint fits the budget.

    Footprint per row (lane-padded layout in VMEM):
      - pred block, double-buffered:   2 * round_up(C,128) * itemsize
      - target (tm,1) i32 block, 2x:   2 * 128 * 4   (lane-padded to 128)
      - f32 elementwise temporaries:  ~4 * round_up(C,128) * 4
    Additionally clamp so the grid keeps >= ~4 steps (megacore / pipelining).
    """
    padded_c = _round_up(c, 128)
    itemsize = jnp.dtype(pred_dtype).itemsize
    per_row = 2 * (padded_c * itemsize + 128 * 4) + 4 * padded_c * 4
    budget = int(vmem_limit * 0.6)          # leave slack for compiler scratch
    tm = max(32, (budget // per_row) // 32 * 32)
    # Keep >= ~4 grid steps so both v7x TensorCores get work and DMA pipelines.
    tm_cap = max(32, _round_up(pl.cdiv(n, 4), 32))
    tm = min(tm, tm_cap)
    # No point tiling beyond (padded) N.
    return min(tm, _round_up(n, 32))


def softmax_focal_loss(pred, target, *, gamma=1.5, loss_weight=1.0, tm=None,
                       n_valid=None):
    """pred: (N, C) float logits (f32 or bf16); target: (N,) int labels.

    Returns the scalar 'sum'-reduced focal loss. `n_valid` (optionally traced)
    lets callers pass pre-padded inputs and reuse one compile across batches.
    """
    n, c = pred.shape
    if n_valid is None:
        n_valid = n

    vmem_limit = _vmem_limit_bytes()
    if tm is None:
        tm = _choose_tm(n, c, pred.dtype, vmem_limit)
    num_tiles = pl.cdiv(n, tm)
    n_pad = num_tiles * tm

    tgt2d = target.astype(jnp.int32).reshape(n, 1)
    if n_pad != n:
        pred = jnp.pad(pred, ((0, n_pad - n), (0, 0)))
        # Pad labels with -1 so they are also dropped by the label-validity mask.
        tgt2d = jnp.pad(tgt2d, ((0, n_pad - n), (0, 0)), constant_values=-1)

    nvalid_arr = jnp.asarray(n_valid, dtype=jnp.int32).reshape(1)

    kernel = functools.partial(
        _softmax_focal_loss_kernel,
        gamma=float(gamma),
        loss_weight=float(loss_weight),
        tm=tm,
    )

    partials = pl.pallas_call(
        kernel,
        out_shape=jax.ShapeDtypeStruct((num_tiles, 1, 1), jnp.float32),
        grid_spec=pltpu.PrefetchScalarGridSpec(
            num_scalar_prefetch=1,
            grid=(num_tiles,),
            in_specs=[
                # NOTE: could sweep pipeline_mode=pl.Buffered(3) on pred once
                # profiled; kept at the default 2 to preserve VMEM headroom.
                pl.BlockSpec((tm, c), lambda i, nv: (i, 0)),
                pl.BlockSpec((tm, 1), lambda i, nv: (i, 0)),
            ],
            out_specs=pl.BlockSpec((1, 1, 1), lambda i, nv: (i, 0, 0)),
        ),
        compiler_params=pltpu.CompilerParams(
            # Independent per-tile partial sums -> megacore-shardable on v7x.
            dimension_semantics=("parallel",),
            vmem_limit_bytes=vmem_limit,
        ),
    )(nvalid_arr, pred, tgt2d)

    return jnp.sum(partials)


def _reference_softmax_focal_loss(pred, target, gamma=1.5, loss_weight=1.0):
    pred = pred.astype(jnp.float32)
    c = pred.shape[-1]
    logp = jax.nn.log_softmax(pred, axis=-1)
    valid = jnp.logical_and(target >= 0, target < c)
    safe_t = jnp.where(valid, target, 0)
    ce = -jnp.take_along_axis(logp, safe_t[:, None], axis=-1)[:, 0]
    ce = jnp.where(valid, ce, 0.0)
    p = jnp.exp(-ce)
    return loss_weight * jnp.sum((1.0 - p) ** gamma * ce)


if __name__ == "__main__":
    key = jax.random.PRNGKey(0)
    k1, k2, k3, k4, k5 = jax.random.split(key, 5)

    # Small shapes consistent with the module: N samples x C classes.
    N, C = 16, 32
    pred = jax.random.normal(k1, (N, C), dtype=jnp.float32)
    target = jax.random.randint(k2, (N,), 0, C, dtype=jnp.int32)

    loss = softmax_focal_loss(pred, target, gamma=1.5, loss_weight=1.0)
    loss = jax.block_until_ready(loss)
    ref = _reference_softmax_focal_loss(pred, target, gamma=1.5, loss_weight=1.0)
    assert jnp.allclose(loss, ref, rtol=1e-5, atol=1e-5), (loss, ref)

    # Non-divisible N (pad + dynamic-mask path) plus an ignored label (-100).
    N2 = 19
    pred2 = jax.random.normal(k3, (N2, C), dtype=jnp.float32)
    target2 = jax.random.randint(k4, (N2,), 0, C, dtype=jnp.int32)
    target2 = target2.at[3].set(-100)
    loss2 = softmax_focal_loss(pred2, target2, gamma=1.5, loss_weight=1.0)
    loss2 = jax.block_until_ready(loss2)
    ref2 = _reference_softmax_focal_loss(pred2, target2, gamma=1.5, loss_weight=1.0)
    assert jnp.allclose(loss2, ref2, rtol=1e-5, atol=1e-5), (loss2, ref2)

    # bf16 logits at the HBM boundary (f32 compute inside the kernel).
    pred3 = jax.random.normal(k5, (N, C), dtype=jnp.float32).astype(jnp.bfloat16)
    loss3 = softmax_focal_loss(pred3, target, gamma=1.5, loss_weight=2.0)
    loss3 = jax.block_until_ready(loss3)
    ref3 = _reference_softmax_focal_loss(pred3, target, gamma=1.5, loss_weight=2.0)
    assert jnp.allclose(loss3, ref3, rtol=1e-4, atol=1e-4), (loss3, ref3)

    print("KERNEL_OK")
</pallas_src>

<mosaic_0001>
module attributes {stable_mosaic.version = 11 : i64} {
  func.func @_softmax_focal_loss_kernel(%arg0: i32, %arg1: memref<1xi32, #tpu.memory_space<smem>>, %arg2: memref<32x32xf32, #tpu.memory_space<vmem>>, %arg3: memref<32x1xi32, #tpu.memory_space<vmem>>, %arg4: memref<1x1x1xf32, #tpu.memory_space<vmem>>) attributes {dimension_semantics = [#tpu.dimension_semantics<parallel>], iteration_bounds = array<i64: 1>, scalar_prefetch = 1 : i64, scratch_operands = 0 : i64, tpu.core_type = #tpu.core_type<tc>, window_params = [{transform_indices = @transform_0, window_bounds = array<i64: 32, 32>}, {transform_indices = @transform_1, window_bounds = array<i64: 32, 1>}, {transform_indices = @transform_2, window_bounds = array<i64: 1, 1, 1>}]} {
    %c0 = arith.constant 0 : index
    %0 = memref.load %arg1[%c0] : memref<1xi32, #tpu.memory_space<smem>>
    %c0_0 = arith.constant 0 : index
    %c0_1 = arith.constant 0 : index
    %1 = vector.load %arg2[%c0_0, %c0_1] : memref<32x32xf32, #tpu.memory_space<vmem>>, vector<32x32xf32>
    %c0_2 = arith.constant 0 : index
    %c0_3 = arith.constant 0 : index
    %2 = vector.load %arg3[%c0_2, %c0_3] : memref<32x1xi32, #tpu.memory_space<vmem>>, vector<32x1xi32>
    %cst = arith.constant dense<0xFF800000> : vector<32xf32>
    %3 = vector.multi_reduction <maximumf>, %1, %cst [1] : vector<32x32xf32> to vector<32xf32>
    %4 = vector.shape_cast %3 : vector<32xf32> to vector<32x1xf32>
    %5 = vector.broadcast %4 : vector<32x1xf32> to vector<32x32xf32>
    %6 = arith.subf %1, %5 : vector<32x32xf32>
    %7 = math.exp %6 : vector<32x32xf32>
    %cst_4 = arith.constant dense<0.000000e+00> : vector<32xf32>
    %8 = vector.multi_reduction <add>, %7, %cst_4 [1] : vector<32x32xf32> to vector<32xf32>
    %9 = vector.shape_cast %8 : vector<32xf32> to vector<32x1xf32>
    %10 = tpu.iota {dimensions = array<i32: 1>} : vector<32x32xi32>
    %11 = vector.broadcast %2 : vector<32x1xi32> to vector<32x32xi32>
    %12 = arith.cmpi eq, %10, %11 : vector<32x32xi32>
    %cst_5 = arith.constant 0.000000e+00 : f32
    %13 = vector.broadcast %cst_5 : f32 to vector<32x32xf32>
    %14 = arith.select %12, %1, %13 : vector<32x32xi1>, vector<32x32xf32>
    %cst_6 = arith.constant dense<0.000000e+00> : vector<32xf32>
    %15 = vector.multi_reduction <add>, %14, %cst_6 [1] : vector<32x32xf32> to vector<32xf32>
    %16 = vector.shape_cast %15 : vector<32xf32> to vector<32x1xf32>
    %cst_7 = arith.constant 0.000000e+00 : f32
    %17 = vector.broadcast %cst_7 : f32 to vector<32x32xf32>
    %18 = arith.select %12, %7, %17 : vector<32x32xi1>, vector<32x32xf32>
    %cst_8 = arith.constant dense<0.000000e+00> : vector<32xf32>
    %19 = vector.multi_reduction <add>, %18, %cst_8 [1] : vector<32x32xf32> to vector<32xf32>
    %20 = vector.shape_cast %19 : vector<32xf32> to vector<32x1xf32>
    %21 = arith.subf %4, %16 : vector<32x1xf32>
    %22 = math.log %9 : vector<32x1xf32>
    %23 = arith.addf %21, %22 : vector<32x1xf32>
    %24 = arith.divf %20, %9 : vector<32x1xf32>
    %cst_9 = arith.constant 1.000000e+00 : f32
    %25 = vector.broadcast %cst_9 : f32 to vector<32x1xf32>
    %26 = arith.subf %25, %24 : vector<32x1xf32>
    %cst_10 = arith.constant 0.000000e+00 : f32
    %27 = vector.broadcast %cst_10 : f32 to vector<32x1xf32>
    %28 = arith.maximumf %26, %27 : vector<32x1xf32>
    %29 = math.sqrt %28 : vector<32x1xf32>
    %30 = arith.mulf %28, %29 : vector<32x1xf32>
    %31 = arith.mulf %30, %23 : vector<32x1xf32>
    %c0_i32 = arith.constant 0 : i32
    %32 = vector.broadcast %c0_i32 : i32 to vector<32x1xi32>
    %33 = arith.cmpi sge, %2, %32 : vector<32x1xi32>
    %c32_i32 = arith.constant 32 : i32
    %34 = vector.broadcast %c32_i32 : i32 to vector<32x1xi32>
    %35 = arith.cmpi slt, %2, %34 : vector<32x1xi32>
    %36 = arith.andi %33, %35 : vector<32x1xi1>
    %cst_11 = arith.constant 0.000000e+00 : f32
    %37 = vector.broadcast %cst_11 : f32 to vector<32x1xf32>
    %38 = arith.select %36, %31, %37 : vector<32x1xi1>, vector<32x1xf32>
    %c1_i32 = arith.constant 1 : i32
    %39 = arith.addi %arg0, %c1_i32 : i32
    %c32_i32_12 = arith.constant 32 : i32
    %40 = arith.muli %39, %c32_i32_12 : i32
    %41 = arith.cmpi sle, %40, %0 : i32
    %42 = arith.extui %41 : i1 to i32
    %c0_i32_13 = arith.constant 0 : i32
    %43 = arith.cmpi ne, %42, %c0_i32_13 : i32
    scf.if %43 {
      %47 = vector.shape_cast %38 : vector<32x1xf32> to vector<1x32x1xf32>
      %cst_15 = arith.constant dense<0.000000e+00> : vector<1xf32>
      %48 = vector.multi_reduction <add>, %47, %cst_15 [1, 2] : vector<1x32x1xf32> to vector<1xf32>
      %49 = vector.shape_cast %48 : vector<1xf32> to vector<1x1x1xf32>
      %50 = vector.extract %49[0, 0, 0] : f32 from vector<1x1x1xf32>
      %cst_16 = arith.constant 1.000000e+00 : f32
      %51 = arith.mulf %cst_16, %50 : f32
      %52 = vector.broadcast %51 : f32 to vector<1x1x1xf32>
      %c0_17 = arith.constant 0 : index
      %c0_18 = arith.constant 0 : index
      %c0_19 = arith.constant 0 : index
      %53 = vector.load %arg4[%c0_17, %c0_18, %c0_19] : memref<1x1x1xf32, #tpu.memory_space<vmem>>, vector<1x1x1xf32>
      tpu.vector_store %arg4[%c0_17, %c0_18, %c0_19], %52 {strides = array<i32>} : memref<1x1x1xf32, #tpu.memory_space<vmem>>, vector<1x1x1xf32>,
    } else {
    }
    %true = arith.constant true
    %44 = arith.xori %41, %true : i1
    %45 = arith.extui %44 : i1 to i32
    %c0_i32_14 = arith.constant 0 : i32
    %46 = arith.cmpi ne, %45, %c0_i32_14 : i32
    scf.if %46 {
      %47 = tpu.iota {dimensions = array<i32: 0>} : vector<32x1xi32>
      %c32_i32_15 = arith.constant 32 : i32
      %48 = arith.muli %arg0, %c32_i32_15 : i32
      %49 = vector.broadcast %48 : i32 to vector<32x1xi32>
      %50 = arith.addi %47, %49 : vector<32x1xi32>
      %51 = vector.broadcast %0 : i32 to vector<32x1xi32>
      %52 = arith.cmpi slt, %50, %51 : vector<32x1xi32>
      %cst_16 = arith.constant 0.000000e+00 : f32
      %53 = vector.broadcast %cst_16 : f32 to vector<32x1xf32>
      %54 = arith.select %52, %38, %53 : vector<32x1xi1>, vector<32x1xf32>
      %55 = vector.shape_cast %54 : vector<32x1xf32> to vector<1x32x1xf32>
      %cst_17 = arith.constant dense<0.000000e+00> : vector<1xf32>
      %56 = vector.multi_reduction <add>, %55, %cst_17 [1, 2] : vector<1x32x1xf32> to vector<1xf32>
      %57 = vector.shape_cast %56 : vector<1xf32> to vector<1x1x1xf32>
      %58 = vector.extract %57[0, 0, 0] : f32 from vector<1x1x1xf32>
      %cst_18 = arith.constant 1.000000e+00 : f32
      %59 = arith.mulf %cst_18, %58 : f32
      %60 = vector.broadcast %59 : f32 to vector<1x1x1xf32>
      %c0_19 = arith.constant 0 : index
      %c0_20 = arith.constant 0 : index
      %c0_21 = arith.constant 0 : index
      %61 = vector.load %arg4[%c0_19, %c0_20, %c0_21] : memref<1x1x1xf32, #tpu.memory_space<vmem>>, vector<1x1x1xf32>
      tpu.vector_store %arg4[%c0_19, %c0_20, %c0_21], %60 {strides = array<i32>} : memref<1x1x1xf32, #tpu.memory_space<vmem>>, vector<1x1x1xf32>,
    } else {
    }
    return
  }
  func.func @transform_0(%arg0: i32, %arg1: memref<1xi32, #tpu.memory_space<smem>>) -> (i32, i32) {
    %c0_i32 = arith.constant 0 : i32
    %c0_i32_0 = arith.constant 0 : i32
    return %arg0, %c0_i32 : i32, i32
  }
  func.func @transform_1(%arg0: i32, %arg1: memref<1xi32, #tpu.memory_space<smem>>) -> (i32, i32) {
    %c0_i32 = arith.constant 0 : i32
    %c0_i32_0 = arith.constant 0 : i32
    return %arg0, %c0_i32 : i32, i32
  }
  func.func @transform_2(%arg0: i32, %arg1: memref<1xi32, #tpu.memory_space<smem>>) -> (i32, i32, i32) {
    %c0_i32 = arith.constant 0 : i32
    %c0_i32_0 = arith.constant 0 : i32
    %c0_i32_1 = arith.constant 0 : i32
    return %arg0, %c0_i32, %c0_i32_0 : i32, i32, i32
  }
}

</mosaic_0001>

<bundles_post_ra>
// kernel: tpu_custom_call.1
= control target key start
LH: loop header
LB: loop body
LE: loop exit
PB: predicated region body
PF: predicated region fallthrough
CT: control target
= control target key end

     0   :  { %vm23_vm0 = vcmask 261120   ;;  %v423_v4 = vmov 0   ;;  %s652_s0 = inlined_call_operand.<no memory space> [shape: s32[1], index: 0, kind: input, shape index: {}]   ;;  %s653_s1 = inlined_call_operand.vmem [shape: f32[32,32], index: 1, kind: input, shape index: {}]   ;;  %s654_s2 = inlined_call_operand.vmem [shape: s32[32,1], index: 2, kind: input, shape index: {}]   ;;  %s655_s3 = inlined_call_operand.hbm [shape: f32[1,1,1], index: 3, kind: output, shape index: {}]  }
   0x1   :  { %v448_v0 = vld [vmem:[%s653_s1 + $0x10] sm:$0xff]  ;;  %v453_v1 = vld [vmem:[%s653_s1] sm:$0xff]  ;;  %363 = vset.pattern.permute.xlu0 %v423_v4  ;;  %364 = vset.pattern.permute.xlu1 %v423_v4 }
   0x2   :  { %v30_v2 = vsel %vm23_vm0, %v448_v0, -inf  ;;  %v24_v3 = vsel %vm23_vm0, %v453_v1, -inf }
   0x3   :  { %31 = vmax.xlane.f32.xlu1 %v30_v2  ;;  %25 = vmax.xlane.f32.xlu0 %v24_v3 }
   0x4   :  { %9 = vsyncpa [#allocation5], 0  ;;  %362 = vset.pattern.permute.xlu2 %v423_v4  ;;  %v462_v5 = vld [vmem:[%s654_s2] sm:$0xff]  ;;  %v18_v6 = vld [vmem:[%s653_s1 + $0x18] sm:$0xff]  ;;  %v60_v29 = vlaneseq  ;;  %p353_p0 = scmp.lt.s32.totalorder %s652_s0, 32 }
   0x5   :  { %v16_v7 = vld [vmem:[%s653_s1 + $0x8] sm:$0xff]  ;;  %63 = vperm.xlu2 %362, %v462_v5   ;;  %v33_v8 = vsel %vm23_vm0, %v18_v6, -inf  ;;  %v482_v11 = vld [vmem:[%s654_s2 + $0x10] sm:$0xff]  ;;  %v488_v12 = vld [vmem:[%s654_s2 + $0x18] sm:$0xff] }
   0x6   :  { %v27_v9 = vsel %vm23_vm0, %v16_v7, -inf  ;;  %v476_v10 = vld [vmem:[%s654_s2 + $0x8] sm:$0xff]  ;;  %v61_v31 = vand.u32 127, %v60_v29 }
   0xb   :  { %34 = vmax.xlane.f32.xlu1 %v33_v8  ;;  %28 = vmax.xlane.f32.xlu0 %v27_v9 }
   0xd   :  { %66 = vperm.xlu2 %362, %v476_v10  }
  0x1f   :  { %69 = vperm.xlu0 %363, %v482_v11  }
  0x24   :  { %72 = vperm.xlu1 %364, %v488_v12  }
  0x5f   :  { %v64_v33 = vpop.permute.xlu2 %63 }
  0x60   :  { %vm74_vm1 = vcmp.eq.s32.totalorder %v61_v31, %v64_v33 }
  0x61   :  { %v78_v51 = vsel %vm74_vm1, %v453_v1, 0.0 }
  0x62   :  { %v82_v52 = vsel %vm23_vm0, %v78_v51, 0.0 }
  0x67   :  { %v67_v37 = vpop.permute.xlu2 %66 }
  0x68   :  { %vm75_vm2 = vcmp.eq.s32.totalorder %v61_v31, %v67_v37 }
  0x69   :  { %v79_v47 = vsel %vm75_vm2, %v16_v7, 0.0 }
  0x6a   :  { %v85_v49 = vsel %vm23_vm0, %v79_v47, 0.0 }
  0x76   :  { %v491_v13 = vpop.xlane.xlu1 %31  ;;  %v493_v14 = vpop.xlane.xlu0 %25 }
  0x77   :  { %v38_v15 = vsub.f32 %v448_v0, %v491_v13  ;;  %v36_v16 = vsub.f32 %v453_v1, %v493_v14 }
  0x79   :  { %v44_v17 = vmul.f32 1.442695, %v38_v15  ;;  %v40_v18 = vmul.f32 1.442695, %v36_v16 }
  0x7b   :  { %365 = vpow2.f32 %v44_v17 }
  0x7c   :  { %367 = vpow2.f32 %v40_v18 }
  0x7e   :  { %v499_v19 = vpop.xlane.xlu1 %34  ;;  %v501_v20 = vpop.xlane.xlu0 %28 }
  0x7f   :  { %v39_v21 = vsub.f32 %v18_v6, %v499_v19  ;;  %v37_v22 = vsub.f32 %v16_v7, %v501_v20 }
  0x81   :  { %v366_v23 = vpop.eup %365  ;;  %v46_v24 = vmul.f32 1.442695, %v39_v21  ;;  %v42_v25 = vmul.f32 1.442695, %v37_v22 }
  0x82   :  { %v368_v26 = vpop.eup %367  ;;  %v54_v27 = vsel %vm23_vm0, %v366_v23, 0.0 }
  0x83   :  { %369 = vpow2.f32 %v46_v24  ;;  %55 = vadd.xlane.f32.xlu0 %v54_v27  ;;  %v48_v28 = vsel %vm23_vm0, %v368_v26, 0.0  ;;  %v94_v36 = vsel %vm74_vm1, %v368_v26, 0.0 }
  0x84   :  { %371 = vpow2.f32 %v42_v25  ;;  %49 = vadd.xlane.f32.xlu2 %v48_v28  ;;  %v98_v38 = vsel %vm23_vm0, %v94_v36, 0.0 }
  0x89   :  { %v370_v30 = vpop.eup %369 }
  0x8a   :  { %v372_v32 = vpop.eup %371  ;;  %v57_v34 = vsel %vm23_vm0, %v370_v30, 0.0 }
  0x8b   :  { %v51_v35 = vsel %vm23_vm0, %v372_v32, 0.0  ;;  %v95_v42 = vsel %vm75_vm2, %v372_v32, 0.0 }
  0x8c   :  { %58 = vadd.xlane.f32.xlu2 %v57_v34  ;;  %52 = vadd.xlane.f32.xlu1 %v51_v35  ;;  %v101_v46 = vsel %vm23_vm0, %v95_v42, 0.0 }
  0x91   :  { %v70_v45 = vpop.permute.xlu0 %69 }
  0x92   :  { %vm76_vm4 = vcmp.eq.s32.totalorder %v61_v31, %v70_v45 }
  0x93   :  { %v96_v48 = vsel %vm76_vm4, %v366_v23, 0.0  ;;  %v80_v53 = vsel %vm76_vm4, %v448_v0, 0.0 }
  0x94   :  { %99 = vadd.xlane.f32.xlu2 %v98_v38  ;;  %v104_v50 = vsel %vm23_vm0, %v96_v48, 0.0  ;;  %v88_v54 = vsel %vm23_vm0, %v80_v53, 0.0 }
  0x96   :  { %v73_v39 = vpop.permute.xlu1 %72 }
  0x97   :  { %vm77_vm3 = vcmp.eq.s32.totalorder %v61_v31, %v73_v39 }
  0x98   :  { %v81_v40 = vsel %vm77_vm3, %v18_v6, 0.0  ;;  %v97_v41 = vsel %vm77_vm3, %v370_v30, 0.0 }
  0x99   :  { %v91_v43 = vsel %vm23_vm0, %v81_v40, 0.0  ;;  %v107_v44 = vsel %vm23_vm0, %v97_v41, 0.0 }
  0x9a   :  { %92 = vadd.xlane.f32.xlu0 %v91_v43  ;;  %108 = vadd.xlane.f32.xlu1 %v107_v44 }
  0x9c   :  { %102 = vadd.xlane.f32.xlu2 %v101_v46 }
  0xa2   :  { %86 = vadd.xlane.f32.xlu1 %v85_v49 }
  0xa4   :  { %105 = vadd.xlane.f32.xlu2 %v104_v50 }
  0xac   :  { %83 = vadd.xlane.f32.xlu2 %v82_v52 }
  0xb4   :  { %89 = vadd.xlane.f32.xlu2 %v88_v54 }
  0xf6   :  { %v525_v56 = vpop.xlane.xlu0 %55 }
  0xf7   :  { %v522_v55 = vpop.xlane.xlu2 %49  ;;  %v167_v47 = vand.u32 2147483648, %v525_v56  ;;  %vm161_vm2 = vweird.f32 %v525_v56  ;;  %v165_v49 = vand.u32 2147483647, %v525_v56 }
  0xf8   :  { %373 = vrcp.f32 %v522_v55  ;;  %v137_v63 = vand.u32 2147483648, %v522_v55  ;;  %v135_v1 = vand.u32 2147483647, %v522_v55  ;;  %vm131_vm6 = vweird.f32 %v522_v55 }
  0xf9   :  { %375 = vrcp.f32 %v525_v56  ;;  %vm166_vm4 = vcmp.eq.f32.partialorder %v165_v49, 8.507059e+37 }
  0xfa   :  { %v138_v6 = vor.u32 1.1754944e-38, %v137_v63  ;;  %vm136_vm8 = vcmp.eq.f32.partialorder %v135_v1, 8.507059e+37 }
  0xfe   :  { %v374_v57 = vpop.eup %373 }
  0xff   :  { %v127_v58 = vmul.f32 %v374_v57, %v522_v55  ;;  %v529_v59 = vpop.xlane.xlu2 %58  ;;  %v531_v60 = vpop.xlane.xlu1 %52  ;;  %vm132_vm5 = vweird.f32 %v374_v57 }
 0x100   :  { %377 = vrcp.f32 %v529_v59  ;;  %v535_v62 = vpop.eup %375  ;;  %vm133_vm7 = vmor %vm131_vm6, %vm132_vm5  ;;  %v180_v23 = vand.u32 2147483647, %v529_v59  ;;  %v182_v24 = vand.u32 2147483648, %v529_v59  ;;  %v152_v28 = vand.u32 2147483648, %v531_v60 }
 0x101   :  { %379 = vrcp.f32 %v531_v60  ;;  %v128_v61 = vsub.f32 1.0, %v127_v58  ;;  %v157_v2 = vmul.f32 %v535_v62, %v525_v56  ;;  %vm146_vm10 = vweird.f32 %v531_v60 }
 0x102   :  { %v150_v31 = vand.u32 2147483647, %v531_v60  ;;  %vm176_vm12 = vweird.f32 %v529_v59  ;;  %v183_v35 = vor.u32 1.1754944e-38, %v182_v24  ;;  %vm181_vm14 = vcmp.eq.f32.partialorder %v180_v23, 8.507059e+37 }
 0x103   :  { %v129_v0 = vmul.f32 %v374_v57, %v128_v61  ;;  %v158_v22 = vsub.f32 1.0, %v157_v2  ;;  %v153_v39 = vor.u32 1.1754944e-38, %v152_v28  ;;  %vm162_vm1 = vweird.f32 %v535_v62 }
 0x104   :  { %vm151_vm0 = vcmp.eq.f32.partialorder %v150_v31, 8.507059e+37  ;;  %vm163_vm3 = vmor %vm161_vm2, %vm162_vm1  ;;  %vm250_vm5 = vcmp.ge.s32.totalorder %v462_v5, 0  ;;  %vm254_vm6 = vcmp.lt.s32.totalorder %v462_v5, 32 }
 0x105   :  { %v130_v3 = vadd.f32 %v374_v57, %v129_v0  ;;  %v159_v34 = vmul.f32 %v535_v62, %v158_v22 }
 0x106   :  { %v378_v4 = vpop.eup %377 }
 0x107   :  { %v380_v7 = vpop.eup %379  ;;  %v172_v8 = vmul.f32 %v378_v4, %v529_v59  ;;  %v134_v9 = vsel %vm133_vm7, %v374_v57, %v130_v3  ;;  %v100_v15 = vpop.xlane.xlu2 %99  ;;  %vm177_vm9 = vweird.f32 %v378_v4  ;;  %v160_v45 = vadd.f32 %v535_v62, %v159_v34 }
 0x108   :  { %v142_v16 = vmul.f32 %v380_v7, %v531_v60  ;;  %v139_v17 = vsel %vm136_vm8, %v138_v6, %v134_v9  ;;  %vm147_vm11 = vweird.f32 %v380_v7  ;;  %vm178_vm13 = vmor %vm176_vm12, %vm177_vm9  ;;  %v168_v57 = vor.u32 1.1754944e-38, %v167_v47 }
 0x109   :  { %v140_v18 = vmul.f32 %v139_v17, %v100_v15  ;;  %v173_v21 = vsub.f32 1.0, %v172_v8  ;;  %vm148_vm15 = vmor %vm146_vm10, %vm147_vm11  ;;  %v164_v53 = vsel %vm163_vm3, %v535_v62, %v160_v45  ;;  %vm253_vm9 = vcmp.ge.s32.totalorder %v488_v12, 0 }
 0x10a   :  { %v143_v25 = vsub.f32 1.0, %v142_v16  ;;  %v169_v63 = vsel %vm166_vm4, %v168_v57, %v164_v53  ;;  %vm257_vm10 = vcmp.lt.s32.totalorder %v488_v12, 32  ;;  %vm251_vm11 = vcmp.ge.s32.totalorder %v476_v10, 0  ;;  %vm591_vm12 = vmand %vm250_vm5, %vm254_vm6 }
 0x10b   :  { %v186_v26 = vsub.f32 1.0, %v140_v18  ;;  %v174_v27 = vmul.f32 %v378_v4, %v173_v21  ;;  %vm261_vm2 = vmand %vm253_vm9, %vm257_vm10  ;;  %vm252_vm4 = vcmp.ge.s32.totalorder %v482_v11, 0  ;;  %vm256_vm6 = vcmp.lt.s32.totalorder %v482_v11, 32 }
 0x10c   :  { %v144_v30 = vmul.f32 %v380_v7, %v143_v25 }
 0x10d   :  { %v549_v32 = vmax.f32 %v186_v26, 0.0  ;;  %v175_v33 = vadd.f32 %v378_v4, %v174_v27  ;;  %v109_v41 = vpop.xlane.xlu1 %108 }
 0x10e   :  { %v145_v36 = vadd.f32 %v380_v7, %v144_v30 }
 0x10f   :  { %v179_v37 = vsel %vm178_vm13, %v378_v4, %v175_v33  ;;  %v103_v38 = vpop.xlane.xlu2 %102  ;;  %381 = vrsqrt.f32 %v549_v32  ;;  %vm201_vm7 = vcmp.eq.f32.partialorder %v549_v32, inf  ;;  %v204_v23 = vand.u32 2147483648, %v549_v32 }
 0x110   :  { %v184_v40 = vsel %vm181_vm14, %v183_v35, %v179_v37  ;;  %v149_v42 = vsel %vm148_vm15, %v380_v7, %v145_v36  ;;  %vm203_vm8 = vcmp.eq.f32.partialorder %v549_v32, 0.0  ;;  %vm255_vm13 = vcmp.lt.s32.totalorder %v476_v10, 32 }
 0x111   :  { %v185_v43 = vmul.f32 %v184_v40, %v109_v41  ;;  %v154_v44 = vsel %vm151_vm0, %v153_v39, %v149_v42  ;;  %vm259_vm3 = vmand %vm251_vm11, %vm255_vm13 }
 0x112   :  { %v155_v46 = vmul.f32 %v154_v44, %v103_v38 }
 0x113   :  { %v189_v48 = vsub.f32 1.0, %v185_v43 }
 0x114   :  { %v187_v50 = vsub.f32 1.0, %v155_v46 }
 0x115   :  { %v382_v51 = vpop.eup %381  ;;  %v559_v52 = vmax.f32 %v189_v48, 0.0  ;;  %v87_v33 = vpop.xlane.xlu1 %86 }
 0x116   :  { %v562_v54 = vmax.f32 %v187_v50, 0.0  ;;  %v195_v58 = vmul.f32 %v382_v51, %v549_v32  ;;  %v111_v5 = vsub.f32 %v501_v20, %v87_v33 }
 0x117   :  { %383 = vrsqrt.f32 %v559_v52  ;;  %v106_v61 = vpop.xlane.xlu2 %105  ;;  %vm237_vm14 = vcmp.eq.f32.partialorder %v559_v52, inf  ;;  %vm239_vm15 = vcmp.eq.f32.partialorder %v559_v52, 0.0  ;;  %v240_v45 = vand.u32 2147483648, %v559_v52 }
 0x118   :  { %385 = vrsqrt.f32 %v562_v54  ;;  %v170_v0 = vmul.f32 %v169_v63, %v106_v61  ;;  %v196_v1 = vmul.f32 %v382_v51, %v195_v58  ;;  %vm213_vm0 = vcmp.eq.f32.partialorder %v562_v54, inf }
 0x119   :  { %387 = vlog2.f32 %v522_v55  ;;  %v216_v47 = vand.u32 2147483648, %v562_v54  ;;  %vm215_vm1 = vcmp.eq.f32.partialorder %v562_v54, 0.0 }
 0x11a   :  { %v188_v2 = vsub.f32 1.0, %v170_v0  ;;  %v197_v3 = vmul.f32 0.5, %v196_v1  ;;  %389 = vlog2.f32 %v529_v59 }
 0x11c   :  { %v568_v62 = vmax.f32 %v188_v2, 0.0  ;;  %v198_v6 = vsub.f32 1.5, %v197_v3 }
 0x11d   :  { %v384_v4 = vpop.eup %383 }
 0x11e   :  { %v386_v7 = vpop.eup %385  ;;  %v231_v8 = vmul.f32 %v384_v4, %v559_v52  ;;  %v199_v15 = vmul.f32 %v382_v51, %v198_v6  ;;  %391 = vrsqrt.f32 %v568_v62  ;;  %vm225_vm5 = vcmp.eq.f32.partialorder %v568_v62, inf }
 0x11f   :  { %v207_v9 = vmul.f32 %v386_v7, %v562_v54  ;;  %v84_v16 = vpop.xlane.xlu2 %83  ;;  %v388_v17 = vpop.eup %387  ;;  %393 = vlog2.f32 %v531_v60 }
 0x120   :  { %v232_v55 = vmul.f32 %v384_v4, %v231_v8  ;;  %v200_v21 = vmul.f32 %v199_v15, %v549_v32  ;;  %v110_v22 = vsub.f32 %v493_v14, %v84_v16  ;;  %v115_v25 = vmul.f32 0.6931472, %v388_v17  ;;  %v390_v27 = vpop.eup %389  ;;  %v93_v14 = vpop.xlane.xlu0 %92 }
 0x121   :  { %v208_v18 = vmul.f32 %v386_v7, %v207_v9  ;;  %395 = vlog2.f32 %v525_v56  ;;  %v121_v39 = vmul.f32 0.6931472, %v390_v27  ;;  %v113_v40 = vsub.f32 %v499_v19, %v93_v14 }
 0x122   :  { %v233_v59 = vmul.f32 0.5, %v232_v55  ;;  %v202_v26 = vsel %vm201_vm7, %v549_v32, %v200_v21  ;;  %v122_v35 = vadd.f32 %v115_v25, %v110_v22  ;;  %vm227_vm7 = vcmp.eq.f32.partialorder %v568_v62, 0.0 }
 0x123   :  { %v209_v24 = vmul.f32 0.5, %v208_v18  ;;  %v205_v30 = vsel %vm203_vm8, %v204_v23, %v202_v26  ;;  %v125_v57 = vadd.f32 %v121_v39, %v113_v40  ;;  %vm260_vm8 = vmand %vm252_vm4, %vm256_vm6 }
 0x124   :  { %v234_v28 = vsub.f32 1.5, %v233_v59  ;;  %v392_v31 = vpop.eup %391  ;;  %v242_v34 = vmul.f32 %v205_v30, %v549_v32 }
 0x125   :  { %v210_v60 = vsub.f32 1.5, %v209_v24  ;;  %v219_v38 = vmul.f32 %v392_v31, %v568_v62  ;;  %v394_v42 = vpop.eup %393 }
 0x126   :  { %v235_v37 = vmul.f32 %v384_v4, %v234_v28  ;;  %v246_v41 = vmul.f32 %v242_v34, %v122_v35  ;;  %v117_v20 = vmul.f32 0.6931472, %v394_v42 }
 0x127   :  { %v211_v32 = vmul.f32 %v386_v7, %v210_v60  ;;  %v220_v44 = vmul.f32 %v392_v31, %v219_v38  ;;  %v396_v51 = vpop.eup %395  ;;  %v90_v1 = vpop.xlane.xlu2 %89 }
 0x128   :  { %v236_v43 = vmul.f32 %v235_v37, %v559_v52  ;;  %v607_v46 = vsel %vm591_vm12, %v246_v41, 0.0  ;;  %v123_v0 = vadd.f32 %v117_v20, %v111_v5  ;;  %v112_v6 = vsub.f32 %v491_v13, %v90_v1 }
 0x129   :  { %v212_v56 = vmul.f32 %v211_v32, %v562_v54  ;;  %v221_v48 = vmul.f32 0.5, %v220_v44  ;;  %v119_v8 = vmul.f32 0.6931472, %v396_v51 }
 0x12a   :  { %v238_v19 = vsel %vm237_vm14, %v559_v52, %v236_v43 }
 0x12b   :  { %v241_v49 = vsel %vm239_vm15, %v240_v45, %v238_v19  ;;  %v214_v50 = vsel %vm213_vm0, %v562_v54, %v212_v56  ;;  %v222_v61 = vsub.f32 1.5, %v221_v48  ;;  %v124_v15 = vadd.f32 %v119_v8, %v112_v6 }
 0x12c   :  { %v245_v53 = vmul.f32 %v241_v49, %v559_v52  ;;  %v217_v58 = vsel %vm215_vm1, %v216_v47, %v214_v50 }
 0x12d   :  { %v243_v63 = vmul.f32 %v217_v58, %v562_v54  ;;  %v223_v3 = vmul.f32 %v392_v31, %v222_v61  ;;  %v228_v54 = vand.u32 2147483648, %v568_v62 }
 0x12e   :  { %v249_v2 = vmul.f32 %v245_v53, %v125_v57 }
 0x12f   :  { %v247_v52 = vmul.f32 %v243_v63, %v123_v0  ;;  %v224_v7 = vmul.f32 %v223_v3, %v568_v62 }
 0x130   :  { %v265_v4 = vsel %vm261_vm2, %v249_v2, 0.0 }
 0x131   :  { %v263_v12 = vsel %vm259_vm3, %v247_v52, 0.0  ;;  %v226_v10 = vsel %vm225_vm5, %v568_v62, %v224_v7 }
 0x132   :  { %v229_v9 = vsel %vm227_vm7, %v228_v54, %v226_v10 }
 0x133   :  { %v244_v13 = vmul.f32 %v229_v9, %v568_v62  ;;  %271 = sbr.rel (%p353_p0) target bundleno = 500 (0x1f4), region = 13 }
 0x135   :  { %v248_v16 = vmul.f32 %v244_v13, %v124_v15 }
 0x137   :  { %v264_v17 = vsel %vm260_vm8, %v248_v16, 0.0 }
 0x138   :  { %vm272_vm9 = vcmask 7168   ;;  %vm290_vm10 = vcmask 0  }
 0x139   :  { %v273_v11 = vsel %vm272_vm9, %v607_v46, 0.0  ;;  %v274_v55 = vsel %vm272_vm9, %v263_v12, 0.0  ;;  %v276_v18 = vsel %vm272_vm9, %v264_v17, 0.0  ;;  %v278_v22 = vsel %vm272_vm9, %v265_v4, 0.0 }
 0x13a   :  { %v275_v21 = vadd.f32 %v274_v55, %v273_v11 }
 0x13c   :  { %v277_v59 = vadd.f32 %v276_v18, %v275_v21 }
 0x13e   :  { %v279_v23 = vadd.f32 %v278_v22, %v277_v59 }
 0x140   :  { %280 = vadd.xlane.f32.xlu0 %v279_v23 }
 0x1b3   :  { %v281_v24 = vpop.xlane.xlu0 %280 }
 0x1b4   :  { %v282_v62 = vrot.slane %v281_v24, 4 }
 0x1b6   :  { %v283_v25 = vadd.f32 %v282_v62, %v281_v24 }
 0x1b8   :  { %v284_v26 = vrot.slane %v283_v25, 2 }
 0x1ba   :  { %v285_v27 = vadd.f32 %v284_v26, %v283_v25 }
 0x1bc   :  { %v286_v28 = vrot.slane %v285_v27, 1 }
 0x1be   :  { %v287_v14 = vadd.f32 %v286_v28, %v285_v27 }
 0x1c0   :  { %356 = vpush %v287_v14 }
 0x1f1   :  { %s357_s28 = spop %356 }
 0x1f2   :  { %v289_v30 = vstv %s357_s28 }
 0x1f3   :  { %291 = vst.msk [vmem:[#allocation4] sm:$0x1] %vm290_vm10, %v289_v30 }
 0x1f4 PF:  { %p355_p1 = scmp.ge.s32.totalorder %s652_s0, 32 }
 0x1f6   :  { %295 = sbr.rel (%p355_p1) target bundleno = 700 (0x2bc), region = 17 }
 0x1fb   :  { %v297_v31 = vshrl.u32 %v60_v29, 7  ;;  %v307_v60 = vstv %s652_s0  ;;  %vm316_vm11 = vcmask 7168   ;;  %vm334_vm0 = vcmask 0  }
 0x1fd   :  { %v298_v33 = vadd.s32 8, %v297_v31  ;;  %v299_v34 = vadd.s32 16, %v297_v31  ;;  %v300_v35 = vadd.s32 24, %v297_v31  ;;  %vm308_vm12 = vcmp.lt.s32.totalorder %v297_v31, %v307_v60 }
 0x1fe   :  { %v312_v36 = vsel %vm308_vm12, %v607_v46, 0.0 }
 0x1ff   :  { %vm309_vm13 = vcmp.lt.s32.totalorder %v298_v33, %v307_v60  ;;  %vm310_vm14 = vcmp.lt.s32.totalorder %v299_v34, %v307_v60  ;;  %vm311_vm15 = vcmp.lt.s32.totalorder %v300_v35, %v307_v60  ;;  %v317_v37 = vsel %vm316_vm11, %v312_v36, 0.0 }
 0x200   :  { %v313_v38 = vsel %vm309_vm13, %v263_v12, 0.0  ;;  %v314_v39 = vsel %vm310_vm14, %v264_v17, 0.0  ;;  %v315_v40 = vsel %vm311_vm15, %v265_v4, 0.0 }
 0x201   :  { %v318_v29 = vsel %vm316_vm11, %v313_v38, 0.0  ;;  %v320_v32 = vsel %vm316_vm11, %v314_v39, 0.0  ;;  %v322_v42 = vsel %vm316_vm11, %v315_v40, 0.0 }
 0x202   :  { %v319_v41 = vadd.f32 %v318_v29, %v317_v37 }
 0x204   :  { %v321_v43 = vadd.f32 %v320_v32, %v319_v41 }
 0x206   :  { %v323_v5 = vadd.f32 %v322_v42, %v321_v43 }
 0x208   :  { %324 = vadd.xlane.f32.xlu0 %v323_v5 }
 0x27b   :  { %v325_v44 = vpop.xlane.xlu0 %324 }
 0x27c   :  { %v326_v45 = vrot.slane %v325_v44, 4 }
 0x27e   :  { %v327_v56 = vadd.f32 %v326_v45, %v325_v44 }
 0x280   :  { %v328_v46 = vrot.slane %v327_v56, 2 }
 0x282   :  { %v329_v19 = vadd.f32 %v328_v46, %v327_v56 }
 0x284   :  { %v330_v47 = vrot.slane %v329_v19, 1 }
 0x286   :  { %v331_v48 = vadd.f32 %v330_v47, %v329_v19 }
 0x288   :  { %358 = vpush %v331_v48 }
 0x2b9   :  { %s359_s0 = spop %358 }
 0x2ba   :  { %v333_v49 = vstv %s359_s0 }
 0x2bb   :  { %335 = vst.msk [vmem:[#allocation4] sm:$0x1] %vm334_vm0, %v333_v49 }
 0x2bc PF:  { %s343_s8 = sshll.u32 %s655_s3, 4  ;;  %s424_s9 = smov [#allocation4]   ;;  %s344_s8 = int_to_ptr.hbm [resolvable:$true] %s343_s8 }
 0x2bd   :  { %s341_s10 = sshll.u32 %s424_s9, 4  ;;  %s342_s10 = int_to_ptr.vmem [resolvable:$true] %s341_s10 }
 0x2be   :  { %346 = dma.vmem_to_hbm [thread:$0]  %s342_s10, 16, %s344_s8, [#allocation5]  }
 0x2bf   :  { %421 = dma.done.wait [#allocation5], 16  }
 0x2c0   :  { %422 = vsyncadd [#allocation5], 4294967280 }
 0x2c1   :  { %351 = vsyncpa [#allocation5], 1 }

</bundles_post_ra>
